<compile_context>
chip_gen: v7x
topology: tpu7x:2x2x1
jax: 0.10.0
libtpu: 0.0.40
codegen_flags: <defaults>
</compile_context>

<pallas_src>
import functools

import jax
import jax.numpy as jnp
import numpy as np
from jax.experimental import pallas as pl
from jax.experimental.pallas import tpu as pltpu


def _round_up(n, m):
    return ((n + m - 1) // m) * m


def _conv_module_kernel(T_orig, K,                 # static (python ints)
                        len_ref,                   # SMEM (B,) int32 (prefetch)
                        x_ref,                     # (1, Tp, Cp) bf16
                        w1a_ref, b1a_ref,          # (Cp, Cp) bf16, (1, Cp) f32
                        w1b_ref, b1b_ref,          # (Cp, Cp) bf16, (1, Cp) f32
                        wd_ref, bd_ref,            # (K, Cp) f32, (1, Cp) f32  (BN folded)
                        wse1_ref, bse1_ref,        # (Cp, Crp) f32, (1, Crp) f32
                        wse2_ref, bse2_ref,        # (Crp, Cp) f32, (1, Cp) f32
                        w2_ref, b2_ref,            # (Cp, Cp) bf16, (1, Cp) f32
                        o_ref):                    # (1, Tp, Cp) f32
    b = pl.program_id(0)
    x = x_ref[0]                                   # (Tp, Cp) bf16
    Tp, Cp = x.shape
    pad = (K - 1) // 2

    t_rows = jax.lax.broadcasted_iota(jnp.int32, (Tp, Cp), 0)

    # ---- pointwise_conv1 (split) + GLU, bf16 MXU inputs / f32 accumulate ----
    a = jnp.dot(x, w1a_ref[...], preferred_element_type=jnp.float32) + b1a_ref[...]
    g = jnp.dot(x, w1b_ref[...], preferred_element_type=jnp.float32) + b1b_ref[...]
    h = a * jax.nn.sigmoid(g)                      # (Tp, Cp) f32
    if T_orig < Tp:
        # zero the statically padded time rows so the 'same' conv padding and
        # the SE pooling see exactly the original T_orig frames.
        h = jnp.where(t_rows < T_orig, h, 0.0)

    # ---- depthwise conv along time: XLU rolls + edge masks (BN pre-folded) ----
    acc_even = jnp.broadcast_to(bd_ref[...], (Tp, Cp)).astype(jnp.float32)
    acc_odd = jnp.zeros((Tp, Cp), jnp.float32)
    for k in range(K):                             # K is small & static -> unrolled
        shift = pad - k
        if shift == 0:
            tap = h
        else:
            rolled = pltpu.roll(h, shift=shift % Tp, axis=0)
            if shift > 0:
                tap = jnp.where(t_rows >= shift, rolled, 0.0)
            else:
                tap = jnp.where(t_rows < Tp + shift, rolled, 0.0)
        contrib = tap * wd_ref[k:k + 1, :]
        if k % 2 == 0:
            acc_even = acc_even + contrib
        else:
            acc_odd = acc_odd + contrib

    # ---- (folded) BatchNorm + ReLU ----
    hb = jnp.maximum(acc_even + acc_odd, 0.0)
    if T_orig < Tp:
        hb = jnp.where(t_rows < T_orig, hb, 0.0)

    # ---- ContextNet SE layer (tiny M=1 matmuls; negligible either way) ----
    length_f = len_ref[b].astype(jnp.float32)
    s = jnp.sum(hb, axis=0, keepdims=True) / length_f                      # (1, Cp)
    s1 = jnp.maximum(
        jnp.dot(s, wse1_ref[...], preferred_element_type=jnp.float32) + bse1_ref[...],
        0.0)                                                               # (1, Crp)
    s2 = jnp.dot(s1, wse2_ref[...], preferred_element_type=jnp.float32) + bse2_ref[...]
    gate = jax.nn.sigmoid(s2)                                              # (1, Cp) f32

    # Gate applied to hb fused with the bf16 cast; the extra (T,C) VPU multiply
    # is hidden under the MXU-bound pw2 at realistic C.
    hs = (hb * gate).astype(jnp.bfloat16)

    # ---- pointwise_conv2 ----
    out = jnp.dot(hs, w2_ref[...], preferred_element_type=jnp.float32) + b2_ref[...]
    o_ref[0] = out.astype(o_ref.dtype)


@jax.jit
def conv_module_forward(x, mask, params):
    """x: (B, T, C) f32, mask: (B, 1, T) bool. Returns (B, T, C) f32."""
    B, T, C = x.shape
    K = params["wd"].shape[0]
    assert K % 2 == 1, "depthwise kernel_size must be odd for 'same' padding"
    Cr = params["wse1"].shape[1]

    Tp = _round_up(max(T, 16), 16)        # bf16 sublane packing
    Cp = _round_up(max(C, 128), 128)      # lane-dense channels
    Crp = _round_up(max(Cr, 128), 128)

    lengths = mask[:, 0, :].sum(axis=1).astype(jnp.int32)                  # (B,)

    # ---- host-side parameter prep: GLU split, BN fold, pad, bf16 cast ----
    def pad2(a, r, c):
        return jnp.pad(a, ((0, r - a.shape[0]), (0, c - a.shape[1])))

    w1, b1 = params["w1"], params["b1"]
    w1a = pad2(w1[:, :C], Cp, Cp).astype(jnp.bfloat16)
    w1b = pad2(w1[:, C:], Cp, Cp).astype(jnp.bfloat16)
    b1a = pad2(b1[:, :C], 1, Cp)
    b1b = pad2(b1[:, C:], 1, Cp)

    # fold eval-mode BatchNorm into the depthwise conv weights / bias
    wd_f = params["wd"] * params["bn_scale"]                               # (K, C)
    bd_f = params["bd"] * params["bn_scale"] + params["bn_shift"]          # (1, C)
    wd_p = pad2(wd_f, K, Cp)
    bd_p = pad2(bd_f, 1, Cp)

    wse1 = pad2(params["wse1"], Cp, Crp)
    bse1 = pad2(params["bse1"], 1, Crp)
    wse2 = pad2(params["wse2"], Crp, Cp)
    bse2 = pad2(params["bse2"], 1, Cp)

    w2 = pad2(params["w2"], Cp, Cp).astype(jnp.bfloat16)
    b2 = pad2(params["b2"], 1, Cp)

    xp = jnp.pad(x, ((0, 0), (0, Tp - T), (0, Cp - C))).astype(jnp.bfloat16)

    # ---- grid / block specs ----
    def full(shp):
        return pl.BlockSpec(shp, lambda b, l, _s=shp: (0,) * len(_s))

    grid_spec = pltpu.PrefetchScalarGridSpec(
        num_scalar_prefetch=1,
        grid=(B,),
        in_specs=[
            pl.BlockSpec((1, Tp, Cp), lambda b, l: (b, 0, 0)),   # x
            full((Cp, Cp)), full((1, Cp)),                       # pw1 half a
            full((Cp, Cp)), full((1, Cp)),                       # pw1 half g
            full((K, Cp)), full((1, Cp)),                        # depthwise (BN folded)
            full((Cp, Crp)), full((1, Crp)),                     # SE fc1
            full((Crp, Cp)), full((1, Cp)),                      # SE fc2
            full((Cp, Cp)), full((1, Cp)),                       # pw2
        ],
        out_specs=pl.BlockSpec((1, Tp, Cp), lambda b, l: (b, 0, 0)),
    )

    # explicit VMEM budget: double-buffered x/out blocks + live f32
    # intermediates + resident weights, with 2x headroom, capped at v7x's 64MiB.
    tc = Tp * Cp
    est = (2 * 2 * tc          # bf16 x blocks, double buffered
           + 2 * 4 * tc        # f32 out blocks, double buffered
           + 10 * 4 * tc       # live f32 intermediates (h, accs, hb, taps, out)
           + 3 * 2 * Cp * Cp   # bf16 w1a / w1b / w2
           + 4 * (K * Cp + 2 * Cp * Crp + 8 * Cp))
    vmem_limit = int(min(max(2 * est, 32 * 1024 * 1024), 64 * 1024 * 1024))

    kernel = functools.partial(_conv_module_kernel, T, K)
    out_padded = pl.pallas_call(
        kernel,
        out_shape=jax.ShapeDtypeStruct((B, Tp, Cp), jnp.float32),
        grid_spec=grid_spec,
        compiler_params=pltpu.CompilerParams(
            dimension_semantics=("parallel",),
            vmem_limit_bytes=vmem_limit),
    )(lengths, xp,
      w1a, b1a, w1b, b1b,
      wd_p, bd_p,
      wse1, bse1, wse2, bse2,
      w2, b2)

    return out_padded[:, :T, :C]


def ref_forward(x, mask, params):
    """Pure-JAX f32 reference of the original module semantics (unfused)."""
    B, T, C = x.shape
    K = params["wd"].shape[0]
    pad = (K - 1) // 2
    lengths = mask[:, 0, :].sum(axis=1).astype(jnp.float32)                # (B,)

    y = jnp.einsum("btc,cd->btd", x, params["w1"]) + params["b1"]
    h = y[..., :C] * jax.nn.sigmoid(y[..., C:])
    hp = jnp.pad(h, ((0, 0), (pad, pad), (0, 0)))
    acc = jnp.broadcast_to(params["bd"], (B, T, C))
    for k in range(K):
        acc = acc + hp[:, k:k + T, :] * params["wd"][k][None, None, :]
    hb = jnp.maximum(acc * params["bn_scale"] + params["bn_shift"], 0.0)
    s = hb.sum(axis=1) / lengths[:, None]
    s1 = jnp.maximum(s @ params["wse1"] + params["bse1"], 0.0)
    gate = jax.nn.sigmoid(s1 @ params["wse2"] + params["bse2"])
    hs = hb * gate[:, None, :]
    return jnp.einsum("btc,cd->btd", hs, params["w2"]) + params["b2"]


def init_params(key, channels, kernel_size):
    """Deterministic synthetic parameters (PyTorch shapes, pre-transposed)."""
    C, K = channels, kernel_size
    Cr = max(C // 8, 1)
    ks = jax.random.split(key, 12)
    n = lambda k, shp, s=0.1: (jax.random.normal(k, shp, jnp.float32) * s)

    # pointwise_conv1: torch weight (2C, C, 1) -> (C, 2C)
    w1 = n(ks[0], (C, 2 * C))
    b1 = n(ks[1], (1, 2 * C))
    # depthwise_conv: torch weight (C, 1, K) -> (K, C)
    wd = n(ks[2], (K, C))
    bd = n(ks[3], (1, C))
    # BatchNorm1d (eval): fold gamma/beta/running stats into scale & shift
    gamma = 1.0 + n(ks[4], (1, C))
    beta = n(ks[5], (1, C))
    r_mean = n(ks[6], (1, C))
    r_var = 1.0 + jnp.abs(n(ks[7], (1, C)))
    eps = 1e-5
    bn_scale = gamma / jnp.sqrt(r_var + eps)
    bn_shift = beta - r_mean * bn_scale
    # ContextNet SE bottleneck (C -> C//8 -> C)
    wse1 = n(ks[8], (C, Cr))
    bse1 = n(ks[9], (1, Cr))
    wse2 = n(ks[10], (Cr, C))
    bse2 = n(ks[11], (1, C))
    # pointwise_conv2: torch weight (C, C, 1) -> (C, C)
    k2a, k2b = jax.random.split(ks[0])
    w2 = n(k2a, (C, C))
    b2 = n(k2b, (1, C))
    return dict(w1=w1, b1=b1, wd=wd, bd=bd, bn_scale=bn_scale, bn_shift=bn_shift,
                wse1=wse1, bse1=bse1, wse2=wse2, bse2=bse2, w2=w2, b2=b2)


if __name__ == "__main__":
    B, T, C, K = 2, 16, 32, 7        # kernel_size odd -> (K-1) % 2 == 0
    key = jax.random.PRNGKey(0)
    k_x, k_p = jax.random.split(key)

    x = jax.random.normal(k_x, (B, T, C), jnp.float32)
    lengths = jnp.array([T, T - 5], jnp.int32)
    mask = (jnp.arange(T)[None, :] < lengths[:, None])[:, None, :]        # (B, 1, T)
    params = init_params(k_p, C, K)

    out = conv_module_forward(x, mask, params)
    out = jax.block_until_ready(out)

    ref = ref_forward(x, mask, params)
    # kernel uses bf16 MXU inputs; compare against the f32 reference at
    # bf16-level tolerance.
    np.testing.assert_allclose(np.asarray(out), np.asarray(ref), rtol=2e-2, atol=2e-2)
    assert out.shape == (B, T, C)

    print("KERNEL_OK")
</pallas_src>

<mosaic_0001>
module attributes {stable_mosaic.version = 11 : i64} {
  func.func @_conv_module_kernel(%arg0: i32, %arg1: memref<2xi32, #tpu.memory_space<smem>>, %arg2: memref<1x16x128xbf16, #tpu.memory_space<vmem>>, %arg3: memref<128x128xbf16, #tpu.memory_space<vmem>>, %arg4: memref<1x128xf32, #tpu.memory_space<vmem>>, %arg5: memref<128x128xbf16, #tpu.memory_space<vmem>>, %arg6: memref<1x128xf32, #tpu.memory_space<vmem>>, %arg7: memref<7x128xf32, #tpu.memory_space<vmem>>, %arg8: memref<1x128xf32, #tpu.memory_space<vmem>>, %arg9: memref<128x128xf32, #tpu.memory_space<vmem>>, %arg10: memref<1x128xf32, #tpu.memory_space<vmem>>, %arg11: memref<128x128xf32, #tpu.memory_space<vmem>>, %arg12: memref<1x128xf32, #tpu.memory_space<vmem>>, %arg13: memref<128x128xbf16, #tpu.memory_space<vmem>>, %arg14: memref<1x128xf32, #tpu.memory_space<vmem>>, %arg15: memref<1x16x128xf32, #tpu.memory_space<vmem>>) attributes {dimension_semantics = [#tpu.dimension_semantics<parallel>], iteration_bounds = array<i64: 2>, scalar_prefetch = 1 : i64, scratch_operands = 0 : i64, tpu.core_type = #tpu.core_type<tc>, window_params = [{transform_indices = @transform_0, window_bounds = array<i64: 1, 16, 128>}, {pipeline_mode = #tpu.pipeline_mode<synchronous>, transform_indices = @transform_1, window_bounds = array<i64: 128, 128>}, {pipeline_mode = #tpu.pipeline_mode<synchronous>, transform_indices = @transform_2, window_bounds = array<i64: 1, 128>}, {pipeline_mode = #tpu.pipeline_mode<synchronous>, transform_indices = @transform_3, window_bounds = array<i64: 128, 128>}, {pipeline_mode = #tpu.pipeline_mode<synchronous>, transform_indices = @transform_4, window_bounds = array<i64: 1, 128>}, {pipeline_mode = #tpu.pipeline_mode<synchronous>, transform_indices = @transform_5, window_bounds = array<i64: 7, 128>}, {pipeline_mode = #tpu.pipeline_mode<synchronous>, transform_indices = @transform_6, window_bounds = array<i64: 1, 128>}, {pipeline_mode = #tpu.pipeline_mode<synchronous>, transform_indices = @transform_7, window_bounds = array<i64: 128, 128>}, {pipeline_mode = #tpu.pipeline_mode<synchronous>, transform_indices = @transform_8, window_bounds = array<i64: 1, 128>}, {pipeline_mode = #tpu.pipeline_mode<synchronous>, transform_indices = @transform_9, window_bounds = array<i64: 128, 128>}, {pipeline_mode = #tpu.pipeline_mode<synchronous>, transform_indices = @transform_10, window_bounds = array<i64: 1, 128>}, {pipeline_mode = #tpu.pipeline_mode<synchronous>, transform_indices = @transform_11, window_bounds = array<i64: 128, 128>}, {pipeline_mode = #tpu.pipeline_mode<synchronous>, transform_indices = @transform_12, window_bounds = array<i64: 1, 128>}, {transform_indices = @transform_13, window_bounds = array<i64: 1, 16, 128>}]} {
    %c0 = arith.constant 0 : index
    %c0_0 = arith.constant 0 : index
    %c0_1 = arith.constant 0 : index
    %0 = vector.load %arg2[%c0, %c0_0, %c0_1] : memref<1x16x128xbf16, #tpu.memory_space<vmem>>, vector<1x16x128xbf16>
    %1 = vector.shape_cast %0 : vector<1x16x128xbf16> to vector<16x128xbf16>
    %2 = tpu.iota {dimensions = array<i32: 0>} : vector<16x128xi32>
    %c0_2 = arith.constant 0 : index
    %c0_3 = arith.constant 0 : index
    %3 = vector.load %arg3[%c0_2, %c0_3] : memref<128x128xbf16, #tpu.memory_space<vmem>>, vector<128x128xbf16>
    %cst = arith.constant dense<0.000000e+00> : vector<16x128xf32>
    %4 = tpu.matmul %1, %3, %cst {dimension_numbers = #tpu.dot_dimension_numbers<[1], [0], [0], [1], [0, 0, 1, 1], [], []>} : vector<16x128xbf16>, vector<128x128xbf16>, vector<16x128xf32> -> vector<16x128xf32>
    %c0_4 = arith.constant 0 : index
    %c0_5 = arith.constant 0 : index
    %5 = vector.load %arg4[%c0_4, %c0_5] : memref<1x128xf32, #tpu.memory_space<vmem>>, vector<1x128xf32>
    %6 = vector.broadcast %5 : vector<1x128xf32> to vector<16x128xf32>
    %7 = arith.addf %4, %6 : vector<16x128xf32>
    %c0_6 = arith.constant 0 : index
    %c0_7 = arith.constant 0 : index
    %8 = vector.load %arg5[%c0_6, %c0_7] : memref<128x128xbf16, #tpu.memory_space<vmem>>, vector<128x128xbf16>
    %cst_8 = arith.constant dense<0.000000e+00> : vector<16x128xf32>
    %9 = tpu.matmul %1, %8, %cst_8 {dimension_numbers = #tpu.dot_dimension_numbers<[1], [0], [0], [1], [0, 0, 1, 1], [], []>} : vector<16x128xbf16>, vector<128x128xbf16>, vector<16x128xf32> -> vector<16x128xf32>
    %c0_9 = arith.constant 0 : index
    %c0_10 = arith.constant 0 : index
    %10 = vector.load %arg6[%c0_9, %c0_10] : memref<1x128xf32, #tpu.memory_space<vmem>>, vector<1x128xf32>
    %11 = vector.broadcast %10 : vector<1x128xf32> to vector<16x128xf32>
    %12 = arith.addf %9, %11 : vector<16x128xf32>
    %13 = arith.negf %12 : vector<16x128xf32>
    %14 = math.exp %13 : vector<16x128xf32>
    %cst_11 = arith.constant 1.000000e+00 : f32
    %15 = vector.broadcast %cst_11 : f32 to vector<16x128xf32>
    %16 = arith.addf %15, %14 : vector<16x128xf32>
    %17 = arith.divf %15, %16 : vector<16x128xf32>
    %18 = arith.mulf %7, %17 : vector<16x128xf32>
    %c0_12 = arith.constant 0 : index
    %c0_13 = arith.constant 0 : index
    %19 = vector.load %arg8[%c0_12, %c0_13] : memref<1x128xf32, #tpu.memory_space<vmem>>, vector<1x128xf32>
    %20 = vector.shape_cast %19 : vector<1x128xf32> to vector<1x128xf32>
    %21 = vector.broadcast %20 : vector<1x128xf32> to vector<16x128xf32>
    %cst_14 = arith.constant 0.000000e+00 : f32
    %22 = vector.broadcast %cst_14 : f32 to vector<16x128xf32>
    %c3_i32 = arith.constant 3 : i32
    %23 = tpu.dynamic_rotate %18 by %c3_i32 dim 0 : vector<16x128xf32>, i32 -> vector<16x128xf32>
    %c3_i32_15 = arith.constant 3 : i32
    %24 = vector.broadcast %c3_i32_15 : i32 to vector<16x128xi32>
    %25 = arith.cmpi sge, %2, %24 : vector<16x128xi32>
    %cst_16 = arith.constant 0.000000e+00 : f32
    %26 = vector.broadcast %cst_16 : f32 to vector<16x128xf32>
    %27 = arith.select %25, %23, %26 : vector<16x128xi1>, vector<16x128xf32>
    %c0_17 = arith.constant 0 : index
    %c0_18 = arith.constant 0 : index
    %28 = vector.load %arg7[%c0_17, %c0_18] : memref<7x128xf32, #tpu.memory_space<vmem>>, vector<1x128xf32>
    %29 = vector.broadcast %28 : vector<1x128xf32> to vector<16x128xf32>
    %30 = arith.mulf %27, %29 : vector<16x128xf32>
    %31 = arith.addf %21, %30 : vector<16x128xf32>
    %c2_i32 = arith.constant 2 : i32
    %32 = tpu.dynamic_rotate %18 by %c2_i32 dim 0 : vector<16x128xf32>, i32 -> vector<16x128xf32>
    %c2_i32_19 = arith.constant 2 : i32
    %33 = vector.broadcast %c2_i32_19 : i32 to vector<16x128xi32>
    %34 = arith.cmpi sge, %2, %33 : vector<16x128xi32>
    %cst_20 = arith.constant 0.000000e+00 : f32
    %35 = vector.broadcast %cst_20 : f32 to vector<16x128xf32>
    %36 = arith.select %34, %32, %35 : vector<16x128xi1>, vector<16x128xf32>
    %c1 = arith.constant 1 : index
    %c0_21 = arith.constant 0 : index
    %37 = vector.load %arg7[%c1, %c0_21] : memref<7x128xf32, #tpu.memory_space<vmem>>, vector<1x128xf32>
    %38 = vector.broadcast %37 : vector<1x128xf32> to vector<16x128xf32>
    %39 = arith.mulf %36, %38 : vector<16x128xf32>
    %40 = arith.addf %22, %39 : vector<16x128xf32>
    %c1_i32 = arith.constant 1 : i32
    %41 = tpu.dynamic_rotate %18 by %c1_i32 dim 0 : vector<16x128xf32>, i32 -> vector<16x128xf32>
    %c1_i32_22 = arith.constant 1 : i32
    %42 = vector.broadcast %c1_i32_22 : i32 to vector<16x128xi32>
    %43 = arith.cmpi sge, %2, %42 : vector<16x128xi32>
    %cst_23 = arith.constant 0.000000e+00 : f32
    %44 = vector.broadcast %cst_23 : f32 to vector<16x128xf32>
    %45 = arith.select %43, %41, %44 : vector<16x128xi1>, vector<16x128xf32>
    %c2 = arith.constant 2 : index
    %c0_24 = arith.constant 0 : index
    %46 = vector.load %arg7[%c2, %c0_24] : memref<7x128xf32, #tpu.memory_space<vmem>>, vector<1x128xf32>
    %47 = vector.broadcast %46 : vector<1x128xf32> to vector<16x128xf32>
    %48 = arith.mulf %45, %47 : vector<16x128xf32>
    %49 = arith.addf %31, %48 : vector<16x128xf32>
    %c3 = arith.constant 3 : index
    %c0_25 = arith.constant 0 : index
    %50 = vector.load %arg7[%c3, %c0_25] : memref<7x128xf32, #tpu.memory_space<vmem>>, vector<1x128xf32>
    %51 = vector.broadcast %50 : vector<1x128xf32> to vector<16x128xf32>
    %52 = arith.mulf %18, %51 : vector<16x128xf32>
    %53 = arith.addf %40, %52 : vector<16x128xf32>
    %c15_i32 = arith.constant 15 : i32
    %54 = tpu.dynamic_rotate %18 by %c15_i32 dim 0 : vector<16x128xf32>, i32 -> vector<16x128xf32>
    %c15_i32_26 = arith.constant 15 : i32
    %55 = vector.broadcast %c15_i32_26 : i32 to vector<16x128xi32>
    %56 = arith.cmpi slt, %2, %55 : vector<16x128xi32>
    %cst_27 = arith.constant 0.000000e+00 : f32
    %57 = vector.broadcast %cst_27 : f32 to vector<16x128xf32>
    %58 = arith.select %56, %54, %57 : vector<16x128xi1>, vector<16x128xf32>
    %c4 = arith.constant 4 : index
    %c0_28 = arith.constant 0 : index
    %59 = vector.load %arg7[%c4, %c0_28] : memref<7x128xf32, #tpu.memory_space<vmem>>, vector<1x128xf32>
    %60 = vector.broadcast %59 : vector<1x128xf32> to vector<16x128xf32>
    %61 = arith.mulf %58, %60 : vector<16x128xf32>
    %62 = arith.addf %49, %61 : vector<16x128xf32>
    %c14_i32 = arith.constant 14 : i32
    %63 = tpu.dynamic_rotate %18 by %c14_i32 dim 0 : vector<16x128xf32>, i32 -> vector<16x128xf32>
    %c14_i32_29 = arith.constant 14 : i32
    %64 = vector.broadcast %c14_i32_29 : i32 to vector<16x128xi32>
    %65 = arith.cmpi slt, %2, %64 : vector<16x128xi32>
    %cst_30 = arith.constant 0.000000e+00 : f32
    %66 = vector.broadcast %cst_30 : f32 to vector<16x128xf32>
    %67 = arith.select %65, %63, %66 : vector<16x128xi1>, vector<16x128xf32>
    %c5 = arith.constant 5 : index
    %c0_31 = arith.constant 0 : index
    %68 = vector.load %arg7[%c5, %c0_31] : memref<7x128xf32, #tpu.memory_space<vmem>>, vector<1x128xf32>
    %69 = vector.broadcast %68 : vector<1x128xf32> to vector<16x128xf32>
    %70 = arith.mulf %67, %69 : vector<16x128xf32>
    %71 = arith.addf %53, %70 : vector<16x128xf32>
    %c13_i32 = arith.constant 13 : i32
    %72 = tpu.dynamic_rotate %18 by %c13_i32 dim 0 : vector<16x128xf32>, i32 -> vector<16x128xf32>
    %c13_i32_32 = arith.constant 13 : i32
    %73 = vector.broadcast %c13_i32_32 : i32 to vector<16x128xi32>
    %74 = arith.cmpi slt, %2, %73 : vector<16x128xi32>
    %cst_33 = arith.constant 0.000000e+00 : f32
    %75 = vector.broadcast %cst_33 : f32 to vector<16x128xf32>
    %76 = arith.select %74, %72, %75 : vector<16x128xi1>, vector<16x128xf32>
    %c6 = arith.constant 6 : index
    %c0_34 = arith.constant 0 : index
    %77 = vector.load %arg7[%c6, %c0_34] : memref<7x128xf32, #tpu.memory_space<vmem>>, vector<1x128xf32>
    %78 = vector.broadcast %77 : vector<1x128xf32> to vector<16x128xf32>
    %79 = arith.mulf %76, %78 : vector<16x128xf32>
    %80 = arith.addf %62, %79 : vector<16x128xf32>
    %81 = arith.addf %80, %71 : vector<16x128xf32>
    %cst_35 = arith.constant 0.000000e+00 : f32
    %82 = vector.broadcast %cst_35 : f32 to vector<16x128xf32>
    %83 = arith.maximumf %81, %82 : vector<16x128xf32>
    %84 = arith.index_cast %arg0 : i32 to index
    %85 = memref.load %arg1[%84] : memref<2xi32, #tpu.memory_space<smem>>
    %86 = arith.sitofp %85 : i32 to f32
    %cst_36 = arith.constant dense<0.000000e+00> : vector<128xf32>
    %87 = vector.multi_reduction <add>, %83, %cst_36 [0] : vector<16x128xf32> to vector<128xf32>
    %88 = vector.shape_cast %87 : vector<128xf32> to vector<1x128xf32>
    %89 = vector.broadcast %86 : f32 to vector<1x128xf32>
    %90 = arith.divf %88, %89 : vector<1x128xf32>
    %c0_37 = arith.constant 0 : index
    %c0_38 = arith.constant 0 : index
    %91 = vector.load %arg9[%c0_37, %c0_38] : memref<128x128xf32, #tpu.memory_space<vmem>>, vector<128x128xf32>
    %cst_39 = arith.constant dense<0.000000e+00> : vector<1x128xf32>
    %92 = tpu.matmul %90, %91, %cst_39 {dimension_numbers = #tpu.dot_dimension_numbers<[1], [0], [0], [1], [0, 0, 1, 1], [], []>} : vector<1x128xf32>, vector<128x128xf32>, vector<1x128xf32> -> vector<1x128xf32>
    %c0_40 = arith.constant 0 : index
    %c0_41 = arith.constant 0 : index
    %93 = vector.load %arg10[%c0_40, %c0_41] : memref<1x128xf32, #tpu.memory_space<vmem>>, vector<1x128xf32>
    %94 = arith.addf %92, %93 : vector<1x128xf32>
    %cst_42 = arith.constant 0.000000e+00 : f32
    %95 = vector.broadcast %cst_42 : f32 to vector<1x128xf32>
    %96 = arith.maximumf %94, %95 : vector<1x128xf32>
    %c0_43 = arith.constant 0 : index
    %c0_44 = arith.constant 0 : index
    %97 = vector.load %arg11[%c0_43, %c0_44] : memref<128x128xf32, #tpu.memory_space<vmem>>, vector<128x128xf32>
    %cst_45 = arith.constant dense<0.000000e+00> : vector<1x128xf32>
    %98 = tpu.matmul %96, %97, %cst_45 {dimension_numbers = #tpu.dot_dimension_numbers<[1], [0], [0], [1], [0, 0, 1, 1], [], []>} : vector<1x128xf32>, vector<128x128xf32>, vector<1x128xf32> -> vector<1x128xf32>
    %c0_46 = arith.constant 0 : index
    %c0_47 = arith.constant 0 : index
    %99 = vector.load %arg12[%c0_46, %c0_47] : memref<1x128xf32, #tpu.memory_space<vmem>>, vector<1x128xf32>
    %100 = arith.addf %98, %99 : vector<1x128xf32>
    %101 = arith.negf %100 : vector<1x128xf32>
    %102 = math.exp %101 : vector<1x128xf32>
    %cst_48 = arith.constant 1.000000e+00 : f32
    %103 = vector.broadcast %cst_48 : f32 to vector<1x128xf32>
    %104 = arith.addf %103, %102 : vector<1x128xf32>
    %105 = arith.divf %103, %104 : vector<1x128xf32>
    %106 = vector.broadcast %105 : vector<1x128xf32> to vector<16x128xf32>
    %107 = arith.mulf %83, %106 : vector<16x128xf32>
    %108 = arith.truncf %107 : vector<16x128xf32> to vector<16x128xbf16>
    %c0_49 = arith.constant 0 : index
    %c0_50 = arith.constant 0 : index
    %109 = vector.load %arg13[%c0_49, %c0_50] : memref<128x128xbf16, #tpu.memory_space<vmem>>, vector<128x128xbf16>
    %cst_51 = arith.constant dense<0.000000e+00> : vector<16x128xf32>
    %110 = tpu.matmul %108, %109, %cst_51 {dimension_numbers = #tpu.dot_dimension_numbers<[1], [0], [0], [1], [0, 0, 1, 1], [], []>} : vector<16x128xbf16>, vector<128x128xbf16>, vector<16x128xf32> -> vector<16x128xf32>
    %c0_52 = arith.constant 0 : index
    %c0_53 = arith.constant 0 : index
    %111 = vector.load %arg14[%c0_52, %c0_53] : memref<1x128xf32, #tpu.memory_space<vmem>>, vector<1x128xf32>
    %112 = vector.broadcast %111 : vector<1x128xf32> to vector<16x128xf32>
    %113 = arith.addf %110, %112 : vector<16x128xf32>
    %c0_54 = arith.constant 0 : index
    %c0_55 = arith.constant 0 : index
    %c0_56 = arith.constant 0 : index
    %114 = vector.load %arg15[%c0_54, %c0_55, %c0_56] : memref<1x16x128xf32, #tpu.memory_space<vmem>>, vector<1x16x128xf32>
    %115 = vector.shape_cast %114 : vector<1x16x128xf32> to vector<16x128xf32>
    %116 = vector.shape_cast %113 : vector<16x128xf32> to vector<1x16x128xf32>
    tpu.vector_store %arg15[%c0_54, %c0_55, %c0_56], %116 {strides = array<i32>} : memref<1x16x128xf32, #tpu.memory_space<vmem>>, vector<1x16x128xf32>,
    return
  }
  func.func @transform_0(%arg0: i32, %arg1: memref<2xi32, #tpu.memory_space<smem>>) -> (i32, i32, i32) {
    %c0_i32 = arith.constant 0 : i32
    %c0_i32_0 = arith.constant 0 : i32
    %c0_i32_1 = arith.constant 0 : i32
    return %arg0, %c0_i32, %c0_i32_0 : i32, i32, i32
  }
  func.func @transform_1(%arg0: i32, %arg1: memref<2xi32, #tpu.memory_space<smem>>) -> (i32, i32) {
    %c0_i32 = arith.constant 0 : i32
    %c0_i32_0 = arith.constant 0 : i32
    %c0_i32_1 = arith.constant 0 : i32
    return %c0_i32, %c0_i32_0 : i32, i32
  }
  func.func @transform_2(%arg0: i32, %arg1: memref<2xi32, #tpu.memory_space<smem>>) -> (i32, i32) {
    %c0_i32 = arith.constant 0 : i32
    %c0_i32_0 = arith.constant 0 : i32
    %c0_i32_1 = arith.constant 0 : i32
    return %c0_i32, %c0_i32_0 : i32, i32
  }
  func.func @transform_3(%arg0: i32, %arg1: memref<2xi32, #tpu.memory_space<smem>>) -> (i32, i32) {
    %c0_i32 = arith.constant 0 : i32
    %c0_i32_0 = arith.constant 0 : i32
    %c0_i32_1 = arith.constant 0 : i32
    return %c0_i32, %c0_i32_0 : i32, i32
  }
  func.func @transform_4(%arg0: i32, %arg1: memref<2xi32, #tpu.memory_space<smem>>) -> (i32, i32) {
    %c0_i32 = arith.constant 0 : i32
    %c0_i32_0 = arith.constant 0 : i32
    %c0_i32_1 = arith.constant 0 : i32
    return %c0_i32, %c0_i32_0 : i32, i32
  }
  func.func @transform_5(%arg0: i32, %arg1: memref<2xi32, #tpu.memory_space<smem>>) -> (i32, i32) {
    %c0_i32 = arith.constant 0 : i32
    %c0_i32_0 = arith.constant 0 : i32
    %c0_i32_1 = arith.constant 0 : i32
    return %c0_i32, %c0_i32_0 : i32, i32
  }
  func.func @transform_6(%arg0: i32, %arg1: memref<2xi32, #tpu.memory_space<smem>>) -> (i32, i32) {
    %c0_i32 = arith.constant 0 : i32
    %c0_i32_0 = arith.constant 0 : i32
    %c0_i32_1 = arith.constant 0 : i32
    return %c0_i32, %c0_i32_0 : i32, i32
  }
  func.func @transform_7(%arg0: i32, %arg1: memref<2xi32, #tpu.memory_space<smem>>) -> (i32, i32) {
    %c0_i32 = arith.constant 0 : i32
    %c0_i32_0 = arith.constant 0 : i32
    %c0_i32_1 = arith.constant 0 : i32
    return %c0_i32, %c0_i32_0 : i32, i32
  }
  func.func @transform_8(%arg0: i32, %arg1: memref<2xi32, #tpu.memory_space<smem>>) -> (i32, i32) {
    %c0_i32 = arith.constant 0 : i32
    %c0_i32_0 = arith.constant 0 : i32
    %c0_i32_1 = arith.constant 0 : i32
    return %c0_i32, %c0_i32_0 : i32, i32
  }
  func.func @transform_9(%arg0: i32, %arg1: memref<2xi32, #tpu.memory_space<smem>>) -> (i32, i32) {
    %c0_i32 = arith.constant 0 : i32
    %c0_i32_0 = arith.constant 0 : i32
    %c0_i32_1 = arith.constant 0 : i32
    return %c0_i32, %c0_i32_0 : i32, i32
  }
  func.func @transform_10(%arg0: i32, %arg1: memref<2xi32, #tpu.memory_space<smem>>) -> (i32, i32) {
    %c0_i32 = arith.constant 0 : i32
    %c0_i32_0 = arith.constant 0 : i32
    %c0_i32_1 = arith.constant 0 : i32
    return %c0_i32, %c0_i32_0 : i32, i32
  }
  func.func @transform_11(%arg0: i32, %arg1: memref<2xi32, #tpu.memory_space<smem>>) -> (i32, i32) {
    %c0_i32 = arith.constant 0 : i32
    %c0_i32_0 = arith.constant 0 : i32
    %c0_i32_1 = arith.constant 0 : i32
    return %c0_i32, %c0_i32_0 : i32, i32
  }
  func.func @transform_12(%arg0: i32, %arg1: memref<2xi32, #tpu.memory_space<smem>>) -> (i32, i32) {
    %c0_i32 = arith.constant 0 : i32
    %c0_i32_0 = arith.constant 0 : i32
    %c0_i32_1 = arith.constant 0 : i32
    return %c0_i32, %c0_i32_0 : i32, i32
  }
  func.func @transform_13(%arg0: i32, %arg1: memref<2xi32, #tpu.memory_space<smem>>) -> (i32, i32, i32) {
    %c0_i32 = arith.constant 0 : i32
    %c0_i32_0 = arith.constant 0 : i32
    %c0_i32_1 = arith.constant 0 : i32
    return %arg0, %c0_i32, %c0_i32_0 : i32, i32, i32
  }
}

</mosaic_0001>

<bundles_post_ra>
// kernel: conv_module_forward.1
= control target key start
LH: loop header
LB: loop body
LE: loop exit
PB: predicated region body
PF: predicated region fallthrough
CT: control target
= control target key end

     0   :  { %s2186_s0 = inlined_call_operand.vmem [shape: s32[2], index: 0, kind: input, shape index: {}]   ;;  %s2187_s1 = inlined_call_operand.vmem [shape: bf16[2,16,128], index: 1, kind: input, shape index: {}]   ;;  %s2188_s2 = inlined_call_operand.vmem [shape: bf16[128,128], index: 2, kind: input, shape index: {}]   ;;  %s2189_s3 = inlined_call_operand.vmem [shape: f32[1,128], index: 3, kind: input, shape index: {}]   ;;  %s2190_s4 = inlined_call_operand.vmem [shape: bf16[128,128], index: 4, kind: input, shape index: {}]   ;;  %s2191_s5 = inlined_call_operand.vmem [shape: f32[1,128], index: 5, kind: input, shape index: {}]   ;;  %s2192_s6 = inlined_call_operand.vmem [shape: f32[7,128], index: 6, kind: input, shape index: {}]   ;;  %s2193_s7 = inlined_call_operand.vmem [shape: f32[1,128], index: 7, kind: input, shape index: {}]   ;;  %s2194_s8 = inlined_call_operand.vmem [shape: f32[128,128], index: 8, kind: input, shape index: {}]   ;;  %s2195_s9 = inlined_call_operand.vmem [shape: f32[1,128], index: 9, kind: input, shape index: {}]   ;;  %s2196_s10 = inlined_call_operand.vmem [shape: f32[128,128], index: 10, kind: input, shape index: {}]   ;;  %s2197_s11 = inlined_call_operand.vmem [shape: f32[1,128], index: 11, kind: input, shape index: {}]   ;;  %s2198_s12 = inlined_call_operand.vmem [shape: bf16[128,128], index: 12, kind: input, shape index: {}]   ;;  %s2199_s13 = inlined_call_operand.vmem [shape: f32[1,128], index: 13, kind: input, shape index: {}]   ;;  %s2200_s14 = inlined_call_operand.hbm [shape: f32[2,16,128], index: 14, kind: output, shape index: {}]  }
   0x1   :  { %s19_s15 = sshll.u32 %s2186_s0, 4  ;;  %s20_s15 = int_to_ptr.vmem [resolvable:$true] %s19_s15 }
   0x2   :  { %s1590_s16 = scalar_lea.vmem %s20_s15, 16  ;;  %p1595_p1 = scmp.lt.s32.totalorder %s20_s15, %s20_s15 }
   0x3   :  { %p1591_p0 = scmp.ne.s32.totalorder %s20_s15, %s1590_s16  ;;  %p1596_p2 = scmp.lt.s32.totalorder %s1590_s16, %s1590_s16 }
   0x5   :  { %p1597_p3 = por %p1596_p2, %p1595_p1 }
   0x7   :  { %p1598_p4 = pnand %p1597_p3, %p1591_p0 }
   0x9   :  { %1601 = shalt.err (!%p1598_p4)  }
   0xa   :  { %s1668_s17 = smov [#allocation3]  }
   0xb   :  { %22 = dma.vmem_to_smem %s20_s15, 16, %s1668_s17, [#allocation2] }
   0xc   :  { %1646 = dma.done.wait [#allocation2], 16 }
   0xd   :  { %1647 = vsyncadd [#allocation2], 4294967280 }
   0xe   :  { %24 = sfence }
   0xf   :  { %25 = vsyncpa [#allocation5], 0 }
  0x10   :  { %27 = vsyncpa [#allocation5 + $0x1], 0  ;;  %s1753_s18 = smov 0   ;;  %s1755_s19 = smov 0  }
  0x11   :  { %s1757_s0 = smov 0   ;;  %s1759_s20 = smov 0  }
  0x12 LB: > { %2204 = sst [smem:[#allocation8_spill]] %s1662_s0  ;;  %s1774_s21 = sadd.s32 4294967295, %s1666_s20   ;;  %s1666_s20 = sphi %s1759_s20, %s2209_s20   ;;  %s1662_s0 = sphi %s1757_s0, %s2211_s0   ;;  %s1658_s19 = sphi %s1755_s19, %s2213_s19   ;;  %s1654_s18 = sphi %s1753_s18, %s2212_s18  }
  0x13   : > { %s1214_s22 = sadd.s32 4294967294, %s1666_s20   ;;  %s1778_s23 = sadd.s32 1, %s1666_s20  }
  0x14   : > { %2205 = sst [smem:[#allocation9_spill]] %s1778_s23  ;;  %s318_s24 = sadd.s32 1, %s1662_s0 }
  0x15   : > { %s315_s25 = ssub.s32 %s1666_s20, %s1778_s23  ;;  %p328_p5 = scmp.ne.s32.totalorder %s1662_s0, %s1658_s19 }
  0x16   : > { %p316_p6 = scmp.eq.s32.totalorder %s315_s25, 0  ;;  %p329_p7 = scmp.eq.s32.totalorder %s1774_s21, 1 }
  0x17   : > { %p334_p8 = scmp.ne.s32.totalorder %s1658_s19, %s1654_s18  ;;  %p335_p9 = scmp.eq.s32.totalorder %s1214_s22, 1 }
  0x18   : > { %s1789_s26 = scalar_select %p316_p6, %s1662_s0, %s318_s24  }
  0x19   : > { %p1791_p10 = por %p329_p7, %p328_p5  ;;  %p1795_p11 = por %p335_p9, %p334_p8 }
  0x1a   : > { %2206 = sst [smem:[#allocation10_spill]] %s1789_s26  ;;  %p1217_p12 = scmp.ge.s32.totalorder %s1666_s20, 1 }
  0x1b   : > { %p397_p13 = scmp.lt.s32.totalorder %s1666_s20, 3 }
  0x1d   : > { %p398_p0 = pnand %p1217_p12, %p397_p13 }
  0x1e   : > { %v1551_v0 = vld [vmem:[%s2188_s2] sm:$0xff] (!%p398_p0)   ;;  %v1669_v1 = vmov (!%p398_p0), 0.0   ;;  %v1552_v2 = vld [vmem:[%s2188_s2 + $0x8] sm:$0xff] (!%p398_p0)   ;;  %vm1670_vm0 = vmmov (!%p398_p0), 0   ;;  %p441_p1 = scmp.lt.s32.totalorder (!%p398_p0), %s1774_s21, 1  ;;  %v1553_v3 = vld [vmem:[%s2188_s2 + $0x10] sm:$0xff] (!%p398_p0)  }
  0x1f   : > { %401 = sbr.rel (%p398_p0) target bundleno = 1067 (0x42b), region = 72  ;;  %1328 = vmatprep.subr.bf16.mxu1 (!%p398_p0), %v1669_v1  ;;  %1344 = vmatprep.mubr.msk.bf16.mxu1 (!%p398_p0), %vm1670_vm0, %v1669_v1  ;;  %v1554_v4 = vld [vmem:[%s2188_s2 + $0x18] sm:$0xff] (!%p398_p0)   ;;  %v1555_v5 = vld [vmem:[%s2188_s2 + $0x20] sm:$0xff] (!%p398_p0)   ;;  %v1556_v6 = vld [vmem:[%s2188_s2 + $0x28] sm:$0xff] (!%p398_p0)   ;;  %v1671_v21 = vmov (!%p398_p0), 0.0|0.0   ;;  %s2057_s22 = sld [smem:[#allocation3 + %s1774_s21]] (!%p398_p0) }
  0x20   : > { %1329 = vmatpush3.bf16.msra.mxu1 (!%p398_p0), %v1551_v0  ;;  %1400 = vmatprep.mubr.msk.f32.mxu0 (!%p398_p0), %vm1670_vm0, %v1669_v1  ;;  %v1557_v7 = vld [vmem:[%s2188_s2 + $0x30] sm:$0xff] (!%p398_p0)   ;;  %v1558_v8 = vld [vmem:[%s2188_s2 + $0x38] sm:$0xff] (!%p398_p0)   ;;  %v1560_v10 = vld [vmem:[%s2190_s4] sm:$0xff] (!%p398_p0)   ;;  %s438_s29 = sand.u32 (!%p398_p0), 1, %s1658_s19   ;;  %s1266_s24 = sshll.u32 (!%p398_p0), %s1774_s21, 8 }
  0x21   : > { %1330 = vmatprep.subr.bf16.mxu1 (!%p398_p0), %v1669_v1  ;;  %v1561_v11 = vld [vmem:[%s2190_s4 + $0x8] sm:$0xff] (!%p398_p0)   ;;  %v1562_v12 = vld [vmem:[%s2190_s4 + $0x10] sm:$0xff] (!%p398_p0)   ;;  %v1563_v13 = vld [vmem:[%s2190_s4 + $0x18] sm:$0xff] (!%p398_p0)   ;;  %1458 = vmatprep.subr.bf16.mxu0 (!%p398_p0), %v1671_v21  ;;  %s1218_s30 = sshll.u32 (!%p398_p0), %s438_s29, 4  ;;  %s2143_s0 = scalar_lea.hbm (!%p398_p0), %s2200_s14, %s1266_s24 }
  0x22   : > { %v1564_v14 = vld [vmem:[%s2190_s4 + $0x20] sm:$0xff] (!%p398_p0)   ;;  %v1565_v15 = vld [vmem:[%s2190_s4 + $0x28] sm:$0xff] (!%p398_p0)   ;;  %v1566_v16 = vld [vmem:[%s2190_s4 + $0x30] sm:$0xff] (!%p398_p0)   ;;  %s2145_s23 = scalar_lea.sflag (!%p398_p0), [#allocation5], %s438_s29 }
  0x23   : > { %v1567_v17 = vld [vmem:[%s2190_s4 + $0x38] sm:$0xff] (!%p398_p0)   ;;  %v836_v18 = vld [vmem:[%s2194_s8] sm:$0xff] (!%p398_p0)  ;;  %v837_v19 = vld [vmem:[%s2194_s8 + $0x8] sm:$0xff] (!%p398_p0) }
  0x24   : > { %1331 = vmatpush3.bf16.msra.mxu1 (!%p398_p0), %v1552_v2  ;;  %v838_v20 = vld [vmem:[%s2194_s8 + $0x10] sm:$0xff] (!%p398_p0)  ;;  %v1459_v22 = vpack.c.bf16 (!%p398_p0), %v837_v19, %v836_v18  ;;  %v839_v23 = vld [vmem:[%s2194_s8 + $0x18] sm:$0xff] (!%p398_p0)  ;;  %v840_v25 = vld [vmem:[%s2194_s8 + $0x20] sm:$0xff] (!%p398_p0)  ;;  %v449_v18 = vlaneseq (!%p398_p0) }
  0x25   : > { %1332 = vmatprep.subr.bf16.mxu1 (!%p398_p0), %v1669_v1  ;;  %v1462_v24 = vpack.c.bf16 (!%p398_p0), %v839_v23, %v838_v20  ;;  %v841_v26 = vld [vmem:[%s2194_s8 + $0x28] sm:$0xff] (!%p398_p0)  ;;  %v842_v28 = vld [vmem:[%s2194_s8 + $0x30] sm:$0xff] (!%p398_p0)  ;;  %v843_v29 = vld [vmem:[%s2194_s8 + $0x38] sm:$0xff] (!%p398_p0) }
  0x26   : > { %s442_s17 = scalar_select %p441_p1, %s1774_s21, 1  ;;  %1460 = vmatpush3.bf16.msra.mxu0 %v1459_v22  ;;  %v1465_v27 = vpack.c.bf16 %v841_v26, %v840_v25  ;;  %v1468_v30 = vpack.c.bf16 %v843_v29, %v842_v28  ;;  %v844_v31 = vld [vmem:[%s2194_s8 + $0x40] sm:$0xff]  ;;  %v845_v32 = vld [vmem:[%s2194_s8 + $0x48] sm:$0xff]  ;;  %v846_v34 = vld [vmem:[%s2194_s8 + $0x50] sm:$0xff]  ;;  %v1988_v19 = vshrl.u32 %v449_v18, 7 }
  0x27   : > { %1461 = vmatprep.subr.bf16.mxu0 %v1671_v21  ;;  %v1471_v33 = vpack.c.bf16 %v845_v32, %v844_v31  ;;  %v847_v35 = vld [vmem:[%s2194_s8 + $0x58] sm:$0xff]  ;;  %v848_v37 = vld [vmem:[%s2194_s8 + $0x60] sm:$0xff]  ;;  %v849_v38 = vld [vmem:[%s2194_s8 + $0x68] sm:$0xff] }
  0x28   : > { %s1265_s25 = sshll.u32 %s442_s17, 3  ;;  %1333 = vmatpush3.bf16.msra.mxu1 %v1553_v3  ;;  %v1474_v36 = vpack.c.bf16 %v847_v35, %v846_v34  ;;  %v1477_v39 = vpack.c.bf16 %v849_v38, %v848_v37  ;;  %v850_v40 = vld [vmem:[%s2194_s8 + $0x70] sm:$0xff]  ;;  %v851_v41 = vld [vmem:[%s2194_s8 + $0x78] sm:$0xff]  ;;  %v924_v43 = vld [vmem:[%s2196_s10] sm:$0xff]  ;;  %vm705_vm1 = vcmp.lt.s32.totalorder %v1988_v19, 3  ;;  %vm723_vm2 = vcmp.lt.s32.totalorder %v1988_v19, 2 }
  0x29   : > { %s445_s15 = scalar_lea.vmem %s2187_s1, %s1265_s25  ;;  %1334 = vmatprep.subr.bf16.mxu1 %v1669_v1  ;;  %v1480_v42 = vpack.c.bf16 %v851_v41, %v850_v40  ;;  %v925_v44 = vld [vmem:[%s2196_s10 + $0x8] sm:$0xff]  ;;  %v926_v45 = vld [vmem:[%s2196_s10 + $0x10] sm:$0xff]  ;;  %v927_v47 = vld [vmem:[%s2196_s10 + $0x18] sm:$0xff]  ;;  %vm741_vm3 = vcmp.lt.s32.totalorder %v1988_v19, 1  ;;  %vm708_vm4 = vcmp.ge.s32.totalorder %v1988_v19, 3  ;;  %vm726_vm5 = vcmp.ge.s32.totalorder %v1988_v19, 2  ;;  %s825_s25 = scvt.s32.f32 %s2057_s22 }
  0x2a   : > { %v1559_v9 = vld [vmem:[%s445_s15] sm:$0xff]   ;;  %1463 = vmatpush3.bf16.msra.mxu0 %v1462_v24  ;;  %v1483_v46 = vpack.c.bf16 %v925_v44, %v924_v43  ;;  %v1486_v48 = vpack.c.bf16 %v927_v47, %v926_v45  ;;  %v929_v50 = vld [vmem:[%s2196_s10 + $0x28] sm:$0xff]  ;;  %v930_v52 = vld [vmem:[%s2196_s10 + $0x30] sm:$0xff]  ;;  %vm744_vm6 = vcmp.ge.s32.totalorder %v1988_v19, 1  ;;  %vm768_vm7 = vcmp.lt.s32.totalorder %v1988_v19, 7  ;;  %s440_s17 = scalar_lea.vmem [#allocation4], %s1218_s30 }
  0x2b   : > { %1464 = vmatprep.subr.bf16.mxu0 %v1671_v21  ;;  %v928_v49 = vld [vmem:[%s2196_s10 + $0x20] sm:$0xff]  ;;  %v931_v53 = vld [vmem:[%s2196_s10 + $0x38] sm:$0xff]  ;;  %v933_v56 = vld [vmem:[%s2196_s10 + $0x48] sm:$0xff]  ;;  %vm786_vm9 = vcmp.lt.s32.totalorder %v1988_v19, 6  ;;  %vm804_vm11 = vcmp.lt.s32.totalorder %v1988_v19, 5  ;;  %s1152_s22 = sshll.u32 %s440_s17, 4  ;;  %s2138_s22 = int_to_ptr.vmem [resolvable:$true] %s1152_s22 }
  0x2c   : > { %1335 = vmatpush3.bf16.msra.mxu1 %v1554_v4  ;;  %v1489_v51 = vpack.c.bf16 %v929_v50, %v928_v49  ;;  %v1492_v54 = vpack.c.bf16 %v931_v53, %v930_v52  ;;  %v932_v55 = vld [vmem:[%s2196_s10 + $0x40] sm:$0xff]  ;;  %v934_v58 = vld [vmem:[%s2196_s10 + $0x50] sm:$0xff]  ;;  %v935_v59 = vld [vmem:[%s2196_s10 + $0x58] sm:$0xff]  ;;  %s1602_s21 = scalar_lea.vmem %s2138_s22, 256  ;;  %s1672_s30 = smov [#allocation4]  }
  0x2d   : > { %1336 = vmatprep.subr.bf16.mxu1 %v1669_v1  ;;  %v1495_v57 = vpack.c.bf16 %v933_v56, %v932_v55  ;;  %v1498_v60 = vpack.c.bf16 %v935_v59, %v934_v58  ;;  %v936_v61 = vld [vmem:[%s2196_s10 + $0x60] sm:$0xff]  ;;  %v937_v62 = vld [vmem:[%s2196_s10 + $0x68] sm:$0xff]  ;;  %p1603_p2 = scmp.ne.s32.totalorder %s2138_s22, %s1602_s21  ;;  %s1606_s16 = sshll.u32 %s1672_s30, 4  ;;  %s1607_s16 = int_to_ptr.vmem [resolvable:$false] %s1606_s16 }
  0x2e   : > { %1466 = vmatpush3.bf16.msra.mxu0 %v1465_v27  ;;  %v1501_v63 = vpack.c.bf16 %v937_v62, %v936_v61  ;;  %v1221_v20 = vld [vmem:[%s2189_s3] ss:$0 sm:$0xff]  ;;  %v1246_v26 = vld [vmem:[%s2192_s6 + $0x3] ss:$0 sm:$0xff]  ;;  %v1244_v38 = vld [vmem:[%s2192_s6 + $0x1] ss:$0 sm:$0xff]  ;;  %p1609_p5 = scmp.lt.s32.totalorder %s2138_s22, %s1607_s16 }
  0x2f   : > { %1467 = vmatprep.subr.bf16.mxu0 %v1671_v21  ;;  %v1243_v31 = vld [vmem:[%s2192_s6] ss:$0 sm:$0xff]  ;;  %v1245_v50 = vld [vmem:[%s2192_s6 + $0x2] ss:$0 sm:$0xff]  ;;  %v1247_v59 = vld [vmem:[%s2192_s6 + $0x4] ss:$0 sm:$0xff]  ;;  %p1604_p3 = pnand %p1603_p2, %p1791_p10 }
  0x30   : > { %1337 = vmatpush3.bf16.msra.mxu1 %v1555_v5  ;;  %v1231_v5 = vld [vmem:[%s2191_s5] ss:$0 sm:$0xff]  ;;  %s1608_s15 = scalar_lea.vmem %s1607_s16, 512 }
  0x31   : > { %1338 = vmatprep.subr.bf16.mxu1 %v1669_v1  ;;  %v1242_v45 = vld [vmem:[%s2193_s7] ss:$0 sm:$0xff]  ;;  %p1605_p4 = pneg %p1604_p3  ;;  %p1610_p6 = scmp.lt.s32.totalorder %s1608_s15, %s1602_s21 }
  0x32   : > { %1469 = vmatpush3.bf16.msra.mxu0 %v1468_v30 }
  0x33   : > { %1470 = vmatprep.subr.bf16.mxu0 %v1671_v21  ;;  %p1611_p7 = por %p1610_p6, %p1609_p5 }
  0x34   : > { %1339 = vmatpush3.bf16.msra.mxu1 %v1556_v6 }
  0x35   : > { %1340 = vmatprep.subr.bf16.mxu1 %v1669_v1  ;;  %p1612_p8 = pnand %p1611_p7, %p1605_p4 }
  0x36   : > { %1472 = vmatpush3.bf16.msra.mxu0 %v1471_v33 }
  0x37   : > { %1473 = vmatprep.subr.bf16.mxu0 %v1671_v21 }
  0x38   : > { %1341 = vmatpush3.bf16.msra.mxu1 %v1557_v7 }
  0x39   : > { %1342 = vmatprep.subr.bf16.mxu1 %v1669_v1 }
  0x3a   : > { %1475 = vmatpush3.bf16.msra.mxu0 %v1474_v36 }
  0x3b   : > { %1476 = vmatprep.subr.bf16.mxu0 %v1671_v21 }
  0x3c   : > { %1343 = vmatpush3.bf16.msra.mxu1 %v1558_v8 }
  0x3d   : > { %1348 = vmatprep.subr.bf16.mxu1 %v1669_v1 }
  0x3e   : > { %1478 = vmatpush3.bf16.msra.mxu0 %v1477_v39 }
  0x3f   : > { %1345 = vmatmul.mubr.bf16.vlgmr.msra.gmra.mrb[0].mxu1 %v1559_v9  ;;  %1479 = vmatprep.subr.bf16.mxu0 %v1671_v21 }
  0x40   : > { %1349 = vmatpush3.bf16.msra.mxu1 %v1560_v10  ;;  %1364 = vmatprep.mubr.msk.bf16.mxu1 %vm1670_vm0, %v1669_v1 }
  0x41   : > { %1350 = vmatprep.subr.bf16.mxu1 %v1669_v1 }
  0x42   : > { %1481 = vmatpush3.bf16.msra.mxu0 %v1480_v42 }
  0x43   : > { %1438 = vmatprep.subr.bf16.mxu0 %v1669_v1 }
  0x44   : > { %1351 = vmatpush3.bf16.msra.mxu1 %v1561_v11 }
  0x45   : > { %1352 = vmatprep.subr.bf16.mxu1 %v1669_v1 }
  0x48   : > { %1353 = vmatpush3.bf16.msra.mxu1 %v1562_v12 }
  0x49   : > { %1354 = vmatprep.subr.bf16.mxu1 %v1669_v1 }
  0x4c   : > { %1355 = vmatpush3.bf16.msra.mxu1 %v1563_v13 }
  0x4d   : > { %1356 = vmatprep.subr.bf16.mxu1 %v1669_v1 }
  0x50   : > { %1357 = vmatpush3.bf16.msra.mxu1 %v1564_v14 }
  0x51   : > { %1358 = vmatprep.subr.bf16.mxu1 %v1669_v1 }
  0x54   : > { %1359 = vmatpush3.bf16.msra.mxu1 %v1565_v15 }
  0x55   : > { %1360 = vmatprep.subr.bf16.mxu1 %v1669_v1 }
  0x58   : > { %1361 = vmatpush3.bf16.msra.mxu1 %v1566_v16 }
  0x59   : > { %1362 = vmatprep.subr.bf16.mxu1 %v1669_v1 }
  0x5c   : > { %1363 = vmatpush3.bf16.msra.mxu1 %v1567_v17 }
  0x5d   : > { %1482 = vmatprep.subr.bf16.mxu1 %v1671_v21 }
  0x5f   : > { %1365 = vmatmul.mubr.bf16.vlgmr.msra.gmra.mrb[4].mxu1 %v1559_v9 }
  0x60   : > { %1435 = vmatprep.mubr.msk.f32.mxu1 %vm1670_vm0, %v1669_v1  ;;  %1484 = vmatpush3.bf16.msra.mxu1 %v1483_v46 }
  0x61   : > { %1485 = vmatprep.subr.bf16.mxu1 %v1671_v21 }
  0x64   : > { %1487 = vmatpush3.bf16.msra.mxu1 %v1486_v48 }
  0x65   : > { %1488 = vmatprep.subr.bf16.mxu1 %v1671_v21 }
  0x68   : > { %1490 = vmatpush3.bf16.msra.mxu1 %v1489_v51 }
  0x69   : > { %1491 = vmatprep.subr.bf16.mxu1 %v1671_v21 }
  0x6c   : > { %1493 = vmatpush3.bf16.msra.mxu1 %v1492_v54 }
  0x6d   : > { %1494 = vmatprep.subr.bf16.mxu1 %v1671_v21 }
  0x70   : > { %1496 = vmatpush3.bf16.msra.mxu1 %v1495_v57 }
  0x71   : > { %1497 = vmatprep.subr.bf16.mxu1 %v1671_v21 }
  0x74   : > { %1499 = vmatpush3.bf16.msra.mxu1 %v1498_v60 }
  0x75   : > { %1500 = vmatprep.subr.bf16.mxu1 %v1671_v21 }
  0x78   : > { %1502 = vmatpush3.bf16.msra.mxu1 %v1501_v63 }
  0x79   : > { %1503 = vmatprep.subr.bf16.mxu1 %v1671_v21  ;;  %v1994_v21 = vadd.s32 8, %v1988_v19 }
  0x7b   : > { %vm772_vm8 = vcmp.lt.s32.totalorder %v1994_v21, 15  ;;  %vm790_vm10 = vcmp.lt.s32.totalorder %v1994_v21, 14  ;;  %vm808_vm12 = vcmp.lt.s32.totalorder %v1994_v21, 13 }
 0x112   : > { %v563_v0 = vpop.f32.mrb[0].mxu1 }
 0x113   : > { %v1346_v2 = vpop.f32.mrb[1].mxu1  ;;  %v564_v22 = vadd.f32 %v1221_v20, %v563_v0  ;;  %v1248_v0 = vld [vmem:[%s2192_s6 + $0x5] ss:$0 sm:$0xff] }
 0x114   : > { %v566_v3 = vpop.f32.mrb[2].mxu1 }
 0x115   : > { %v1347_v4 = vpop.f32.mrb[3].mxu1  ;;  %v567_v24 = vadd.f32 %v1221_v20, %v566_v3 }
 0x132   : > { %v675_v6 = vpop.f32.mrb[4].mxu1 }
 0x133   : > { %v676_v7 = vadd.f32 %v1231_v5, %v675_v6  ;;  %v1366_v8 = vpop.f32.mrb[5].mxu1 }
 0x134   : > { %v678_v9 = vpop.f32.mrb[6].mxu1 }
 0x135   : > { %v1240_v10 = vmul.f32 -1.442695, %v676_v7  ;;  %v679_v11 = vadd.f32 %v1231_v5, %v678_v9  ;;  %v1367_v12 = vpop.f32.mrb[7].mxu1 }
 0x137   : > { %1576 = vpow2.f32 %v1240_v10  ;;  %v1241_v13 = vmul.f32 -1.442695, %v679_v11 }
 0x139   : > { %1578 = vpow2.f32 %v1241_v13 }
 0x141   : > { %v1577_v14 = vpop.eup %1576 }
 0x142   : > { %v688_v15 = vadd.f32 1.0, %v1577_v14  ;;  %v1249_v14 = vld [vmem:[%s2192_s6 + $0x6] ss:$0 sm:$0xff] }
 0x143   : > { %v1579_v16 = vpop.eup %1578 }
 0x144   : > { %1580 = vrcp.f32 %v688_v15  ;;  %v689_v17 = vadd.f32 1.0, %v1579_v16 }
 0x146   : > { %1582 = vrcp.f32 %v689_v17 }
 0x14e   : > { %v1581_v23 = vpop.eup %1580 }
 0x14f   : > { %v1999_v25 = vmul.f32 %v1581_v23, %v564_v22 }
 0x150   : > { %v1583_v27 = vpop.eup %1582 }
 0x151   : > { %v695_v28 = vmul.f32 %v1583_v27, %v567_v24  ;;  %v703_v29 = vrot.slane %v1999_v25, 5  ;;  %v721_v30 = vrot.slane %v1999_v25, 6  ;;  %v739_v32 = vrot.slane %v1999_v25, 7 }
 0x152   : > { %v762_v33 = vmul.f32 %v1246_v26, %v1999_v25  ;;  %v766_v34 = vrot.slane %v1999_v25, 1  ;;  %v784_v35 = vrot.slane %v1999_v25, 2  ;;  %v802_v40 = vrot.slane %v1999_v25, 3 }
 0x153   : > { %v704_v36 = vrot.slane %v695_v28, 5  ;;  %v722_v37 = vrot.slane %v695_v28, 6  ;;  %v740_v39 = vrot.slane %v695_v28, 7  ;;  %v763_v41 = vmul.f32 %v1246_v26, %v695_v28 }
 0x154   : > { %v767_v42 = vrot.slane %v695_v28, 1  ;;  %v785_v43 = vrot.slane %v695_v28, 2  ;;  %v803_v44 = vrot.slane %v695_v28, 3 }
 0x155   : > { %v706_v46 = vsel %vm705_vm1, %v703_v29, %v704_v36  ;;  %v707_v47 = vsel %vm705_vm1, %v704_v36, %v703_v29  ;;  %v724_v48 = vsel %vm723_vm2, %v721_v30, %v722_v37  ;;  %v725_v49 = vsel %vm723_vm2, %v722_v37, %v721_v30 }
 0x156   : > { %v710_v51 = vsel %vm708_vm4, %v707_v47, 0.0  ;;  %v718_v52 = vmul.f32 %v1243_v31, %v706_v46  ;;  %v728_v53 = vsel %vm726_vm5, %v725_v49, 0.0  ;;  %v736_v54 = vmul.f32 %v1244_v38, %v724_v48  ;;  %v852_v47 = vld [vmem:[%s2195_s9] sm:$0x1] }
 0x157   : > { %v717_v55 = vmul.f32 %v1243_v31, %v710_v51  ;;  %v735_v56 = vmul.f32 %v1244_v38, %v728_v53  ;;  %v742_v57 = vsel %vm741_vm3, %v739_v32, %v740_v39  ;;  %v743_v58 = vsel %vm741_vm3, %v740_v39, %v739_v32  ;;  %v1569_v53 = vld [vmem:[%s2198_s12 + $0x8] sm:$0xff]  }
 0x158   : > { %v720_v60 = vadd.f32 %v1242_v45, %v718_v52  ;;  %v746_v61 = vsel %vm744_vm6, %v743_v58, 0.0  ;;  %v754_v62 = vmul.f32 %v1245_v50, %v742_v57  ;;  %v765_v63 = vadd.f32 %v763_v41, %v736_v54  ;;  %v1568_v52 = vld [vmem:[%s2198_s12] sm:$0xff]   ;;  %v1570_v54 = vld [vmem:[%s2198_s12 + $0x10] sm:$0xff]   ;;  %v1573_v57 = vld [vmem:[%s2198_s12 + $0x28] sm:$0xff]  }
 0x159   : > { %v719_v2 = vadd.f32 %v1242_v45, %v717_v55  ;;  %v753_v3 = vmul.f32 %v1245_v50, %v746_v61  ;;  %v764_v4 = vadd.f32 %v762_v33, %v735_v56  ;;  %v769_v5 = vsel %vm768_vm7, %v766_v34, %v767_v42  ;;  %v939_v45 = vld [vmem:[%s2196_s10 + $0x78] sm:$0xff]  ;;  %v1572_v56 = vld [vmem:[%s2198_s12 + $0x20] sm:$0xff]   ;;  %v1574_v58 = vld [vmem:[%s2198_s12 + $0x30] sm:$0xff]  }
 0x15a   : > { %v756_v6 = vadd.f32 %v754_v62, %v720_v60  ;;  %v770_v7 = vsel %vm768_vm7, %v767_v42, %v766_v34  ;;  %v780_v8 = vmul.f32 %v1247_v59, %v769_v5  ;;  %v787_v9 = vsel %vm786_vm9, %v784_v35, %v785_v43  ;;  %v1571_v55 = vld [vmem:[%s2198_s12 + $0x18] sm:$0xff]   ;;  %v940_v60 = vld [vmem:[%s2197_s11] sm:$0x1] }
 0x15b   : > { %v755_v10 = vadd.f32 %v753_v3, %v719_v2  ;;  %v774_v11 = vsel %vm772_vm8, %v770_v7, 0.0  ;;  %v788_v12 = vsel %vm786_vm9, %v785_v43, %v784_v35  ;;  %v798_v13 = vmul.f32 %v1248_v0, %v787_v9  ;;  %v1251_v9 = vld [vmem:[%s2199_s13] ss:$0 sm:$0xff] }
 0x15c   : > { %v781_v15 = vmul.f32 %v1247_v59, %v774_v11  ;;  %v792_v16 = vsel %vm790_vm10, %v788_v12, 0.0  ;;  %v805_v17 = vsel %vm804_vm11, %v802_v40, %v803_v44  ;;  %v806_v18 = vsel %vm804_vm11, %v803_v44, %v802_v40  ;;  %v938_v44 = vld [vmem:[%s2196_s10 + $0x70] sm:$0xff]  ;;  %v1575_v59 = vld [vmem:[%s2198_s12 + $0x38] sm:$0xff]  }
 0x15d   : > { %v782_v20 = vadd.f32 %v780_v8, %v755_v10  ;;  %v799_v22 = vmul.f32 %v1248_v0, %v792_v16  ;;  %v800_v23 = vadd.f32 %v798_v13, %v764_v4  ;;  %v810_v24 = vsel %vm808_vm12, %v806_v18, 0.0 }
 0x15e   : > { %v783_v25 = vadd.f32 %v781_v15, %v756_v6  ;;  %v816_v26 = vmul.f32 %v1249_v14, %v805_v17  ;;  %v817_v27 = vmul.f32 %v1249_v14, %v810_v24  ;;  %v833_v35 = vstv %s825_s25 }
 0x15f   : > { %v801_v28 = vadd.f32 %v799_v22, %v765_v63  ;;  %1584 = vrcp.f32 %v833_v35  ;;  %v1504_v46 = vpack.c.bf16 %v939_v45, %v938_v44  ;;  %v1019_v4 = vsub.s32 0, %v1988_v19 }
 0x160   : > { %v818_v29 = vadd.f32 %v816_v26, %v782_v20  ;;  %v819_v30 = vadd.f32 %v817_v27, %v783_v25 }
 0x161   : > { %1505 = vmatpush3.bf16.msra.mxu1 %v1504_v46 }
 0x162   : > { %v2081_v31 = vadd.f32 %v818_v29, %v800_v23  ;;  %v2083_v32 = vadd.f32 %v819_v30, %v801_v28 }
 0x164   : > { %v822_v33 = vmax.f32 %v2081_v31, 0.0  ;;  %v823_v34 = vmax.f32 %v2083_v32, 0.0 }
 0x166   : > { %v826_v36 = vadd.f32 %v823_v34, %v822_v33 }
 0x168   : > { %v827_v21 = vrot.slane %v826_v36, 4 }
 0x169   : > { %v1585_v41 = vpop.eup %1584 }
 0x16a   : > { %v828_v37 = vadd.f32 %v827_v21, %v826_v36 }
 0x16c   : > { %v829_v38 = vrot.slane %v828_v37, 2 }
 0x16e   : > { %v830_v39 = vadd.f32 %v829_v38, %v828_v37 }
 0x170   : > { %v831_v40 = vrot.slane %v830_v39, 1 }
 0x172   : > { %v832_v42 = vadd.f32 %v831_v40, %v830_v39 }
 0x174   : > { %v835_v43 = vmul.f32 %v1585_v41, %v832_v42 }
 0x176   : > { %1401 = vmatmul.mubr.f32.vlgmr.msra.gmra.mrb[0].mxu0 %v835_v43 }
 0x177   : > { %1454 = vmatprep.mubr.msk.bf16.mxu0 %vm1670_vm0, %v1669_v1  ;;  %1439 = vmatpush3.bf16.msra.mxu0 %v1568_v52 }
 0x178   : > { %1440 = vmatprep.subr.bf16.mxu0 %v1669_v1 }
 0x17b   : > { %1441 = vmatpush3.bf16.msra.mxu0 %v1569_v53 }
 0x17c   : > { %1442 = vmatprep.subr.bf16.mxu0 %v1669_v1 }
 0x17f   : > { %1443 = vmatpush3.bf16.msra.mxu0 %v1570_v54 }
 0x180   : > { %1444 = vmatprep.subr.bf16.mxu0 %v1669_v1 }
 0x183   : > { %1445 = vmatpush3.bf16.msra.mxu0 %v1571_v55 }
 0x184   : > { %1446 = vmatprep.subr.bf16.mxu0 %v1669_v1 }
 0x187   : > { %1447 = vmatpush3.bf16.msra.mxu0 %v1572_v56 }
 0x188   : > { %1448 = vmatprep.subr.bf16.mxu0 %v1669_v1 }
 0x18b   : > { %1449 = vmatpush3.bf16.msra.mxu0 %v1573_v57 }
 0x18c   : > { %1450 = vmatprep.subr.bf16.mxu0 %v1669_v1 }
 0x18f   : > { %1451 = vmatpush3.bf16.msra.mxu0 %v1574_v58 }
 0x190   : > { %1452 = vmatprep.subr.bf16.mxu0 %v1669_v1 }
 0x193   : > { %1453 = vmatpush3.bf16.msra.mxu0 %v1575_v59 }
 0x249   : > { %v919_v48 = vpop.f32.mrb[0].mxu0 }
 0x24a   : > { %v920_v49 = vadd.f32 %v919_v48, %v852_v47  ;;  %v1402_v50 = vpop.f32.mrb[1].mxu0 }
 0x24c   : > { %v923_v51 = vmax.f32 %v920_v49, 0.0 }
 0x24e   : > { %1436 = vmatmul.mubr.f32.vlgmr.msra.gmra.mrb[8].mxu1 %v923_v51 }
 0x321   : > { %v1007_v61 = vpop.f32.mrb[8].mxu1 }
 0x322   : > { %v1008_v62 = vadd.f32 %v1007_v61, %v940_v60  ;;  %v1437_v63 = vpop.f32.mrb[9].mxu1 }
 0x324   : > { %v1250_v0 = vmul.f32 -1.442695, %v1008_v62 }
 0x326   : > { %1586 = vpow2.f32 %v1250_v0 }
 0x330   : > { %v1587_v2 = vpop.eup %1586 }
 0x331   : > { %v1014_v3 = vadd.f32 1.0, %v1587_v2 }
 0x333   : > { %1588 = vrcp.f32 %v1014_v3 }
 0x33d   : > { %v1589_v5 = vpop.eup %1588 }
 0x33e   : > { %v1020_v6 = vrot.slane %v1589_v5, %v1019_v4 }
 0x340   : > { %v1021_v1 = vmul.f32 %v1020_v6, %v822_v33  ;;  %v1022_v7 = vmul.f32 %v1020_v6, %v823_v34 }
 0x342   : > { %v1023_v8 = vpack.c.bf16 %v1022_v7, %v1021_v1 }
 0x344   : > { %1455 = vmatmul.mubr.bf16.vlgmr.msra.gmra.mrb[4].mxu0 %v1023_v8 }
 0x417   : > { %v1129_v10 = vpop.f32.mrb[4].mxu0 }
 0x418   : > { %v1130_v11 = vadd.f32 %v1251_v9, %v1129_v10  ;;  %v1456_v12 = vpop.f32.mrb[5].mxu0 }
 0x419   : > { %v1132_v19 = vpop.f32.mrb[6].mxu0 }
 0x41a   : > { %1136 = vst [vmem:[%s440_s17] sm:$0xff] %v1130_v11  ;;  %v1133_v13 = vadd.f32 %v1251_v9, %v1132_v19  ;;  %v1457_v14 = vpop.f32.mrb[7].mxu0 }
 0x41c   : > { %1137 = vst [vmem:[%s440_s17 + $0x8] sm:$0xff] %v1133_v13 }
 0x41d   : > { %1615 = shalt.err (!%p1612_p8)
}
 0x41e   : > { %s1616_s29 = scalar_lea.hbm %s2143_s0, 256  ;;  %s1620_s26 = scalar_lea.hbm %s2200_s14, 512 }
 0x41f   : > { %p1617_p9 = scmp.ne.s32.totalorder %s2143_s0, %s1616_s29  ;;  %p1621_p0 = scmp.lt.u32.totalorder %s2143_s0, %s2200_s14 }
 0x420   : > { %p1622_p1 = scmp.lt.u32.totalorder %s1620_s26, %s1616_s29  ;;  %p1624_p3 = scmp.lt.u32.totalorder %s1616_s29, %s2143_s0 }
 0x421   : > { %p1618_p12 = pnand %p1617_p9, %p1791_p10 }
 0x422   : > { %p1623_p2 = por %p1622_p1, %p1621_p0 }
 0x423   : > { %p1619_p13 = pneg %p1618_p12 }
 0x424   : > { %p1625_p4 = por %p1624_p3, %p1623_p2 }
 0x426   : > { %p1626_p5 = pnand %p1625_p4, %p1619_p13 }
 0x428   : > { %1629 = shalt.err (!%p1626_p5)
}
 0x429   : > { %s1673_s21 = smov 128   ;;  %s1674_s16 = smov 8  }
 0x42a   : > { %1506 = dma.vmem_to_hbm [thread:$0]  (%p1791_p10), %s2138_s22, 256, %s2143_s0, %s2145_s23, %s1673_s21, %s1673_s21, %s1674_s16  }
 0x42b PF: > { %p1512_p6 = scmp.ge.s32.totalorder %s1666_s20, 2  ;;  %s1167_s15 = sand.u32 1, %s1654_s18  }
 0x42c   : > { %s1168_s29 = scalar_lea.sflag [#allocation5], %s1167_s15 }
 0x42d   : > { %p1509_p7 = pnand %p1512_p6, %p1795_p11 }
 0x42f   : > { %1649 = dma.done.wait (!%p1509_p7), %s1168_s29, 256  }
 0x430   : > { %1651 = vsyncadd (!%p1509_p7), %s1168_s29, 4294967040  ;;  %s2209_s20 = sld [smem:[#allocation9_spill]]  ;;  %s2210_s17 = sld [smem:[#allocation8_spill]] }
 0x431   : > { %s2211_s0 = sld [smem:[#allocation10_spill]]  ;;  %s2212_s18 = smov %s1658_s19 }
 0x436   : > { %p30_p8 = scmp.ge.s32.totalorder %s2209_s20, 4   ;;  %s2213_s19 = smov %s2210_s17 }
 0x438   :  { %32 = sbr.rel (!%p30_p8) target bundleno = 18 (0x12), region = 107 }
 0x43f   :  { %1173 = vsyncpa [#allocation5], 1 }
 0x440   :  { %1175 = vsyncpa [#allocation5 + $0x1], 1 }

</bundles_post_ra>
